<compile_context>
chip_gen: v5e
topology: v5e:2x2
jax: 0.10.0
libtpu: 0.0.40
codegen_flags: <defaults>
</compile_context>

<pallas_src>
import functools

import jax
import jax.numpy as jnp
import numpy as np
from jax import lax
from jax.experimental import pallas as pl
from jax.experimental.pallas import tpu as pltpu


def _move_loss_kernel(ag_ref, dg_ref, out_ref, *, thr2, total_t, tile_t):
    # ag_ref : (tile_t, D) in VMEM   -- achieved_goals[0, tile, :]
    # dg_ref : (1, D)      in VMEM   -- desired_goal row (resident across tiles)
    # out_ref: (1, 1)      in SMEM   -- scalar accumulator / result
    pid = pl.program_id(0)

    @pl.when(pid == 0)
    def _():
        out_ref[0, 0] = jnp.float32(0.0)

    ag = ag_ref[...]
    dg = dg_ref[...]
    if ag.dtype != jnp.float32:
        ag = ag.astype(jnp.float32)
    if dg.dtype != jnp.float32:
        dg = dg.astype(jnp.float32)

    diff = ag - dg                                               # (tile_t, D)
    sq_dist = jnp.sum(diff * diff, axis=1, keepdims=True)        # (tile_t, 1)

    # Mask rows beyond T (partial last tile reads padded/garbage data).
    row = lax.broadcasted_iota(jnp.int32, (tile_t, 1), 0) + pid * tile_t
    valid = row < total_t

    below = jnp.logical_and(valid, sq_dist < jnp.float32(thr2))  # (tile_t, 1)
    partial = jnp.sum(jnp.where(below, jnp.float32(1.0), jnp.float32(0.0)))

    out_ref[0, 0] += partial


def move_on_the_last_part_loss(achieved_goals, desired_goal, threshold):
    """Pallas implementation of MoveOntheLastPartLoss.forward.

    achieved_goals: [B, T, D]
    desired_goal:   [D]
    returns: scalar float32 == number of timesteps of batch 0 whose L2 distance
             to desired_goal is strictly below `threshold`.
    """
    B, T, D = achieved_goals.shape
    dg = desired_goal.reshape(1, -1)  # (1, D)

    # Squared-threshold comparison is only valid for threshold >= 0; a negative
    # threshold means "count nothing" (distance >= 0), encoded as thr2 = -1.
    threshold = float(threshold)
    thr2 = threshold * threshold if threshold >= 0.0 else -1.0

    # Tile over T.  Cap at 1024 rows (1024*D*4 bytes * 2 buffers stays tiny on
    # v5e/v6e/v7x).  1024 is divisible by 8 (sublane rule); a tile equal to the
    # full T is always legal.
    max_tile_t = 1024
    tile_t = T if T <= max_tile_t else max_tile_t
    num_tiles = pl.cdiv(T, tile_t)

    kernel = functools.partial(
        _move_loss_kernel, thr2=thr2, total_t=T, tile_t=tile_t
    )

    out = pl.pallas_call(
        kernel,
        out_shape=jax.ShapeDtypeStruct((1, 1), jnp.float32),
        grid=(num_tiles,),
        in_specs=[
            # Only batch 0 is ever DMA'd: batch dim squeezed, pinned to block 0.
            pl.BlockSpec((pl.Squeezed(), tile_t, D), lambda i: (0, i, 0)),
            # desired_goal stays resident in VMEM across all tiles.
            pl.BlockSpec((1, D), lambda i: (0, 0)),
        ],
        out_specs=pl.BlockSpec(
            (1, 1), lambda i: (0, 0), memory_space=pltpu.MemorySpace.SMEM
        ),
        compiler_params=pltpu.CompilerParams(
            dimension_semantics=("arbitrary",),
        ),
    )(achieved_goals, dg)
    return out[0, 0]


def _reference(achieved_goals, desired_goal, threshold):
    diff = achieved_goals[0].astype(jnp.float32) - desired_goal[None, :].astype(
        jnp.float32
    )
    dist = jnp.sqrt(jnp.sum(diff * diff, axis=1))
    return jnp.sum((dist < threshold).astype(jnp.float32))


if __name__ == "__main__":
    # Deterministic "module init": threshold is the only __init__ parameter.
    threshold = 6.0

    B, T, D = 2, 8, 32
    key = jax.random.PRNGKey(0)
    k1, k2 = jax.random.split(key)
    achieved_goals = jax.random.normal(k1, (B, T, D), dtype=jnp.float32)
    desired_goal = jax.random.normal(k2, (D,), dtype=jnp.float32)

    result = move_on_the_last_part_loss(achieved_goals, desired_goal, threshold)
    result = jax.block_until_ready(result)

    ref = _reference(achieved_goals, desired_goal, threshold)
    np.testing.assert_allclose(np.asarray(result), np.asarray(ref), rtol=0, atol=0)

    # Extra check: a larger, non-tile-aligned T exercises the grid + mask path.
    T2 = 2500
    k3, k4 = jax.random.split(k2)
    ag2 = jax.random.normal(k3, (B, T2, D), dtype=jnp.float32) * 3.0
    dg2 = jax.random.normal(k4, (D,), dtype=jnp.float32)
    r2 = jax.block_until_ready(move_on_the_last_part_loss(ag2, dg2, threshold))
    np.testing.assert_allclose(
        np.asarray(r2), np.asarray(_reference(ag2, dg2, threshold)), rtol=0, atol=0
    )

    print("KERNEL_OK")
</pallas_src>

<mosaic_0001>
module attributes {stable_mosaic.version = 11 : i64} {
  func.func @_move_loss_kernel(%arg0: i32, %arg1: memref<1x8x32xf32, #tpu.memory_space<vmem>>, %arg2: memref<1x32xf32, #tpu.memory_space<vmem>>, %arg3: memref<1x1xf32, #tpu.memory_space<smem>>) attributes {dimension_semantics = [#tpu.dimension_semantics<arbitrary>], iteration_bounds = array<i64: 1>, scalar_prefetch = 0 : i64, scratch_operands = 0 : i64, tpu.core_type = #tpu.core_type<tc>, window_params = [{transform_indices = @transform_0, window_bounds = array<i64: 1, 8, 32>}, {pipeline_mode = #tpu.pipeline_mode<synchronous>, transform_indices = @transform_1, window_bounds = array<i64: 1, 32>}, {transform_indices = @transform_2, window_bounds = array<i64: 1, 1>}]} {
    %c0_i32 = arith.constant 0 : i32
    %0 = arith.cmpi eq, %arg0, %c0_i32 : i32
    %1 = arith.extui %0 : i1 to i32
    %c0_i32_0 = arith.constant 0 : i32
    %2 = arith.cmpi ne, %1, %c0_i32_0 : i32
    scf.if %2 {
      %cst_14 = arith.constant 0.000000e+00 : f32
      %c0_15 = arith.constant 0 : index
      %c0_16 = arith.constant 0 : index
      %30 = memref.load %arg3[%c0_15, %c0_16] : memref<1x1xf32, #tpu.memory_space<smem>>
      memref.store %cst_14, %arg3[%c0_15, %c0_16] : memref<1x1xf32, #tpu.memory_space<smem>>
    } else {
    }
    %c0 = arith.constant 0 : index
    %c0_1 = arith.constant 0 : index
    %c0_2 = arith.constant 0 : index
    %3 = vector.load %arg1[%c0, %c0_1, %c0_2] : memref<1x8x32xf32, #tpu.memory_space<vmem>>, vector<1x8x32xf32>
    %4 = vector.shape_cast %3 : vector<1x8x32xf32> to vector<8x32xf32>
    %c0_3 = arith.constant 0 : index
    %c0_4 = arith.constant 0 : index
    %5 = vector.load %arg2[%c0_3, %c0_4] : memref<1x32xf32, #tpu.memory_space<vmem>>, vector<1x32xf32>
    %6 = vector.broadcast %5 : vector<1x32xf32> to vector<8x32xf32>
    %7 = arith.subf %4, %6 : vector<8x32xf32>
    %8 = arith.mulf %7, %7 : vector<8x32xf32>
    %cst = arith.constant dense<0.000000e+00> : vector<8xf32>
    %9 = vector.multi_reduction <add>, %8, %cst [1] : vector<8x32xf32> to vector<8xf32>
    %10 = vector.shape_cast %9 : vector<8xf32> to vector<8x1xf32>
    %11 = tpu.iota {dimensions = array<i32: 0>} : vector<8x1xi32>
    %c8_i32 = arith.constant 8 : i32
    %12 = arith.muli %arg0, %c8_i32 : i32
    %13 = vector.broadcast %12 : i32 to vector<8x1xi32>
    %14 = arith.addi %11, %13 : vector<8x1xi32>
    %c8_i32_5 = arith.constant 8 : i32
    %15 = vector.broadcast %c8_i32_5 : i32 to vector<8x1xi32>
    %16 = arith.cmpi slt, %14, %15 : vector<8x1xi32>
    %cst_6 = arith.constant 3.600000e+01 : f32
    %17 = vector.broadcast %cst_6 : f32 to vector<8x1xf32>
    %18 = arith.cmpf olt, %10, %17 : vector<8x1xf32>
    %19 = arith.andi %16, %18 : vector<8x1xi1>
    %cst_7 = arith.constant 1.000000e+00 : f32
    %cst_8 = arith.constant 0.000000e+00 : f32
    %20 = vector.broadcast %cst_7 : f32 to vector<8x1xf32>
    %21 = vector.broadcast %cst_8 : f32 to vector<8x1xf32>
    %22 = arith.select %19, %20, %21 : vector<8x1xi1>, vector<8x1xf32>
    %23 = vector.shape_cast %22 : vector<8x1xf32> to vector<1x8x1xf32>
    %cst_9 = arith.constant dense<0.000000e+00> : vector<1xf32>
    %24 = vector.multi_reduction <add>, %23, %cst_9 [1, 2] : vector<1x8x1xf32> to vector<1xf32>
    %25 = vector.shape_cast %24 : vector<1xf32> to vector<1x1x1xf32>
    %26 = vector.extract %25[0, 0, 0] : f32 from vector<1x1x1xf32>
    %c0_10 = arith.constant 0 : index
    %c0_11 = arith.constant 0 : index
    %27 = memref.load %arg3[%c0_10, %c0_11] : memref<1x1xf32, #tpu.memory_space<smem>>
    %28 = arith.addf %27, %26 : f32
    %c0_12 = arith.constant 0 : index
    %c0_13 = arith.constant 0 : index
    %29 = memref.load %arg3[%c0_12, %c0_13] : memref<1x1xf32, #tpu.memory_space<smem>>
    memref.store %28, %arg3[%c0_12, %c0_13] : memref<1x1xf32, #tpu.memory_space<smem>>
    return
  }
  func.func @transform_0(%arg0: i32) -> (i32, i32, i32) {
    %c0_i32 = arith.constant 0 : i32
    %c0_i32_0 = arith.constant 0 : i32
    %c0_i32_1 = arith.constant 0 : i32
    return %c0_i32, %arg0, %c0_i32_0 : i32, i32, i32
  }
  func.func @transform_1(%arg0: i32) -> (i32, i32) {
    %c0_i32 = arith.constant 0 : i32
    %c0_i32_0 = arith.constant 0 : i32
    %c0_i32_1 = arith.constant 0 : i32
    return %c0_i32, %c0_i32_0 : i32, i32
  }
  func.func @transform_2(%arg0: i32) -> (i32, i32) {
    %c0_i32 = arith.constant 0 : i32
    %c0_i32_0 = arith.constant 0 : i32
    %c0_i32_1 = arith.constant 0 : i32
    return %c0_i32, %c0_i32_0 : i32, i32
  }
}

</mosaic_0001>

<bundles_post_ra>
// kernel: tpu_custom_call.1
= control target key start
LH: loop header
LB: loop body
LE: loop exit
PB: predicated region body
PF: predicated region fallthrough
CT: control target
= control target key end

     0   :  { %7 = vsyncpa [#allocation3], 0  ;;  %s200_s0 = inlined_call_operand.hbm [shape: f32[2,8,32], index: 0, kind: input, shape index: {}]   ;;  %s201_s1 = inlined_call_operand.hbm [shape: f32[1,32], index: 1, kind: input, shape index: {}]   ;;  %s202_s2 = inlined_call_operand.hbm [shape: f32[1,1], index: 2, kind: output, shape index: {}]  }
   0x1   :  { %8 = vsyncpa [#allocation6], 0 }
   0x2   :  { %9 = vsyncpa [#allocation4], 0  ;;  %s15_s11 = sshll.u32 %s200_s0, 4  ;;  %s172_s12 = smov [#allocation2]   ;;  %s16_s11 = int_to_ptr.hbm [resolvable:$true] %s15_s11 }
   0x3   :  { %s17_s13 = sshll.u32 %s172_s12, 4  ;;  %s26_s16 = sshll.u32 %s201_s1, 4  ;;  %s18_s13 = int_to_ptr.vmem [resolvable:$true] %s17_s13  ;;  %s27_s16 = int_to_ptr.hbm [resolvable:$true] %s26_s16 }
   0x4   :  { %20 = dma.hbm_to_vmem [thread:$0]  %s16_s11, 128, %s18_s13, [#allocation3]  }
   0x5   :  { %s173_s17 = smov [#allocation5]  }
   0x6   :  { %s28_s18 = sshll.u32 %s173_s17, 4  ;;  %s29_s18 = int_to_ptr.vmem [resolvable:$true] %s28_s18 }
   0x7   :  { %31 = dma.hbm_to_vmem [thread:$0]  %s27_s16, 16, %s29_s18, [#allocation6]  }
   0x8   :  { %166 = dma.done.wait [#allocation3], 128  }
   0x9   :  { %167 = vsyncadd [#allocation3], 4294967168 }
   0xa   :  { %168 = dma.done.wait [#allocation6], 16  }
   0xb   :  { %169 = vsyncadd [#allocation6], 4294967280  ;;  %v46_v0 = vld [vmem:[#allocation2] sm:$0xff]  ;;  %v105_v1 = vld [vmem:[#allocation5] ss:$0 sm:$0xff]  ;;  %vm53_vm0 = vcmask 261120  }
   0xc   :  { %v51_v2 = vsub.f32 %v46_v0, %v105_v1  ;;  %vm66_vm1 = vcmask 7168   ;;  %v174_v6 = vmov 0.0   ;;  %s86_s19 = sshll.u32 %s202_s2, 4  ;;  %s175_s21 = smov [#allocation7]   ;;  %s87_s19 = int_to_ptr.hbm [resolvable:$true] %s86_s19 }
   0xe   :  { %v52_v3 = vmul.f32 %v51_v2, %v51_v2 }
  0x10   :  { %v54_v4 = vsel %vm53_vm0, %v52_v3, 0.0 }
  0x11   :  { %55 = vadd.xlane.f32.xlu0 %v54_v4 }
  0x84   :  { %v56_v5 = vpop.xlane.xlu0 %55 }
  0x85   :  { %vm63_vm2 = vcmp.lt.f32.partialorder %v56_v5, 36.0 }
  0x86   :  { %v65_v7 = vsel %vm63_vm2, 1.0, %v174_v6 }
  0x87   :  { %v67_v8 = vsel %vm66_vm1, %v65_v7, 0.0 }
  0x88   :  { %68 = vadd.xlane.f32.xlu0 %v67_v8 }
  0xfb   :  { %v69_v9 = vpop.xlane.xlu0 %68 }
  0xfc   :  { %v70_v10 = vrot.slane %v69_v9, 4 }
  0xfe   :  { %v71_v11 = vadd.f32 %v70_v10, %v69_v9 }
 0x100   :  { %v72_v12 = vrot.slane %v71_v11, 2 }
 0x102   :  { %v73_v13 = vadd.f32 %v72_v12, %v71_v11 }
 0x104   :  { %v74_v14 = vrot.slane %v73_v13, 1 }
 0x106   :  { %v75_v15 = vadd.f32 %v74_v14, %v73_v13 }
 0x108   :  { %98 = vpush %v75_v15 }
 0x139   :  { %s99_s20 = spop %98 }
 0x13a   :  { %80 = sst [smem:[#allocation7]] %s99_s20 }
 0x13b   :  { %89 = dma.smem_to_hbm %s175_s21, 16, %s87_s19, [#allocation4]  }
 0x13c   :  { %170 = dma.done.wait [#allocation4], 16  }
 0x13d   :  { %171 = vsyncadd [#allocation4], 4294967280 }
 0x13e   :  { %94 = sfence }
 0x13f   :  { %95 = vsyncpa [#allocation3], 1 }
 0x140   :  { %96 = vsyncpa [#allocation6], 1 }
 0x141   :  { %97 = vsyncpa [#allocation4], 1 }

</bundles_post_ra>
